<compile_context>
chip_gen: v7x
topology: tpu7x:2x2x1
jax: 0.10.0
libtpu: 0.0.40
codegen_flags: <defaults>
</compile_context>

<pallas_src>
import jax
import jax.numpy as jnp
from jax.experimental import pallas as pl
from jax.experimental.pallas import tpu as pltpu


def _sigmoid(z):
    # EUP tanh; mathematically identical to 1/(1+exp(-z)) and stable for all z.
    return 0.5 * (jnp.tanh(0.5 * z) + 1.0)


def mlp_scorer_kernel(x_ref, w1_ref, b1_ref, w2_ref, b2_ref, o_ref):
    # Layer 1 on the MXU: (H, D) @ (D, TB) -> (H, TB); batch on the 128-lane axis.
    h = jnp.dot(w1_ref[...], x_ref[...], preferred_element_type=jnp.float32)
    h = _sigmoid(h + b1_ref[...])                              # b1 (H,1) broadcasts over lanes
    # Layer 2 off the MXU: per-sublane scale + cross-sublane reduce (VPU + XLU).
    out = jnp.sum(h * w2_ref[...], axis=0, keepdims=True)      # (1, TB)
    o_ref[...] = _sigmoid(out + b2_ref[0])                     # b2 scalar read from SMEM


def _pick_tile_b(B):
    # Largest lane-aligned (x128) tile that still leaves >= 2 grid steps for
    # DMA/compute overlap; fall back to the whole batch for tiny / odd B.
    for cand in (2048, 1024, 512, 256, 128):
        if B % cand == 0 and B // cand >= 2:
            return cand
    return B


def mlp_scorer(x, w1, b1, w2, b2, *, tile_b=None):
    """x: (B, D) f32; weights in PyTorch (out, in) order:
       w1: (H, D); b1: (H,); w2: (1, H); b2: (1,).  Returns (B, 1) f32."""
    B, D = x.shape
    H, _ = w1.shape
    if tile_b is None:
        tile_b = _pick_tile_b(B)
    assert B % tile_b == 0, "batch must be divisible by tile_b"
    assert tile_b == B or tile_b % 128 == 0, "tile_b must be lane-aligned (x128) or the full batch"

    x_t = x.T                       # (D, B): batch -> lane axis (layout plumbing only)
    b1_2d = b1.reshape(H, 1)
    w2_2d = w2.reshape(H, 1)        # W2 row stored as a column for sublane broadcast

    grid = (B // tile_b,)
    out_t = pl.pallas_call(
        mlp_scorer_kernel,
        out_shape=jax.ShapeDtypeStruct((1, B), jnp.float32),
        grid_spec=pltpu.PrefetchScalarGridSpec(
            num_scalar_prefetch=0,
            grid=grid,
            in_specs=[
                pl.BlockSpec((D, tile_b), lambda i: (0, i)),          # x^T tile (streamed)
                pl.BlockSpec((H, D), lambda i: (0, 0)),               # W1 (resident)
                pl.BlockSpec((H, 1), lambda i: (0, 0)),               # b1
                pl.BlockSpec((H, 1), lambda i: (0, 0)),               # W2 as column
                pl.BlockSpec(memory_space=pltpu.MemorySpace.SMEM),    # b2 scalar
            ],
            out_specs=pl.BlockSpec((1, tile_b), lambda i: (0, i)),    # lane-dense output
        ),
        compiler_params=pltpu.CompilerParams(
            dimension_semantics=("parallel",),
        ),
    )(x_t, w1, b1_2d, w2_2d, b2)
    return out_t.reshape(B, 1)


def mlp_scorer_ref(x, w1, b1, w2, b2):
    h = jax.nn.sigmoid(x @ w1.T + b1[None, :])
    return jax.nn.sigmoid(h @ w2.T + b2[None, :])


if __name__ == "__main__":
    # Small shapes consistent with the module:
    #   classifier_input_size = 32, classifier_intermediate_dim = 32,
    #   batch = 256 so the lane-dense tiling (tile_b=128, grid=2) is exercised.
    B, D, H = 256, 32, 32

    key = jax.random.PRNGKey(0)
    kx, kw1, kb1, kw2, kb2 = jax.random.split(key, 5)

    x = jax.random.normal(kx, (B, D), dtype=jnp.float32)
    # Parameters kept in PyTorch nn.Linear storage order (out_features, in_features).
    w1 = jax.random.normal(kw1, (H, D), dtype=jnp.float32) * 0.1
    b1 = jax.random.normal(kb1, (H,), dtype=jnp.float32) * 0.1
    w2 = jax.random.normal(kw2, (1, H), dtype=jnp.float32) * 0.1
    b2 = jax.random.normal(kb2, (1,), dtype=jnp.float32) * 0.1

    out = jax.block_until_ready(mlp_scorer(x, w1, b1, w2, b2))

    ref = mlp_scorer_ref(x, w1, b1, w2, b2)
    assert out.shape == (B, 1)
    # Tolerance accounts for the EUP tanh-based sigmoid approximation.
    assert jnp.allclose(out, ref, atol=1e-4, rtol=1e-4), "mismatch vs reference"

    print("KERNEL_OK")
</pallas_src>

<mosaic_0001>
module attributes {stable_mosaic.version = 11 : i64} {
  func.func @mlp_scorer_kernel(%arg0: i32, %arg1: memref<32x128xf32, #tpu.memory_space<vmem>>, %arg2: memref<32x32xf32, #tpu.memory_space<vmem>>, %arg3: memref<32x1xf32, #tpu.memory_space<vmem>>, %arg4: memref<32x1xf32, #tpu.memory_space<vmem>>, %arg5: memref<1xf32, #tpu.memory_space<smem>>, %arg6: memref<1x128xf32, #tpu.memory_space<vmem>>) attributes {dimension_semantics = [#tpu.dimension_semantics<parallel>], iteration_bounds = array<i64: 2>, scalar_prefetch = 0 : i64, scratch_operands = 0 : i64, tpu.core_type = #tpu.core_type<tc>, window_params = [{transform_indices = @transform_0, window_bounds = array<i64: 32, 128>}, {pipeline_mode = #tpu.pipeline_mode<synchronous>, transform_indices = @transform_1, window_bounds = array<i64: 32, 32>}, {pipeline_mode = #tpu.pipeline_mode<synchronous>, transform_indices = @transform_2, window_bounds = array<i64: 32, 1>}, {pipeline_mode = #tpu.pipeline_mode<synchronous>, transform_indices = @transform_3, window_bounds = array<i64: 32, 1>}, {transform_indices = @transform_4, window_bounds = array<i64: 1>}, {transform_indices = @transform_5, window_bounds = array<i64: 1, 128>}]} {
    %c0 = arith.constant 0 : index
    %c0_0 = arith.constant 0 : index
    %0 = vector.load %arg2[%c0, %c0_0] : memref<32x32xf32, #tpu.memory_space<vmem>>, vector<32x32xf32>
    %c0_1 = arith.constant 0 : index
    %c0_2 = arith.constant 0 : index
    %1 = vector.load %arg1[%c0_1, %c0_2] : memref<32x128xf32, #tpu.memory_space<vmem>>, vector<32x128xf32>
    %cst = arith.constant dense<0.000000e+00> : vector<32x128xf32>
    %2 = tpu.matmul %0, %1, %cst {dimension_numbers = #tpu.dot_dimension_numbers<[1], [0], [0], [1], [0, 0, 1, 1], [], []>} : vector<32x32xf32>, vector<32x128xf32>, vector<32x128xf32> -> vector<32x128xf32>
    %c0_3 = arith.constant 0 : index
    %c0_4 = arith.constant 0 : index
    %3 = vector.load %arg3[%c0_3, %c0_4] : memref<32x1xf32, #tpu.memory_space<vmem>>, vector<32x1xf32>
    %4 = vector.broadcast %3 : vector<32x1xf32> to vector<32x128xf32>
    %5 = arith.addf %2, %4 : vector<32x128xf32>
    %cst_5 = arith.constant 5.000000e-01 : f32
    %6 = vector.broadcast %cst_5 : f32 to vector<32x128xf32>
    %7 = arith.mulf %6, %5 : vector<32x128xf32>
    %8 = math.tanh %7 : vector<32x128xf32>
    %cst_6 = arith.constant 1.000000e+00 : f32
    %9 = vector.broadcast %cst_6 : f32 to vector<32x128xf32>
    %10 = arith.addf %8, %9 : vector<32x128xf32>
    %cst_7 = arith.constant 5.000000e-01 : f32
    %11 = vector.broadcast %cst_7 : f32 to vector<32x128xf32>
    %12 = arith.mulf %11, %10 : vector<32x128xf32>
    %c0_8 = arith.constant 0 : index
    %c0_9 = arith.constant 0 : index
    %13 = vector.load %arg4[%c0_8, %c0_9] : memref<32x1xf32, #tpu.memory_space<vmem>>, vector<32x1xf32>
    %14 = vector.broadcast %13 : vector<32x1xf32> to vector<32x128xf32>
    %15 = arith.mulf %12, %14 : vector<32x128xf32>
    %cst_10 = arith.constant dense<0.000000e+00> : vector<128xf32>
    %16 = vector.multi_reduction <add>, %15, %cst_10 [0] : vector<32x128xf32> to vector<128xf32>
    %17 = vector.shape_cast %16 : vector<128xf32> to vector<1x128xf32>
    %c0_11 = arith.constant 0 : index
    %18 = memref.load %arg5[%c0_11] : memref<1xf32, #tpu.memory_space<smem>>
    %19 = vector.broadcast %18 : f32 to vector<1x128xf32>
    %20 = arith.addf %17, %19 : vector<1x128xf32>
    %cst_12 = arith.constant 5.000000e-01 : f32
    %21 = vector.broadcast %cst_12 : f32 to vector<1x128xf32>
    %22 = arith.mulf %21, %20 : vector<1x128xf32>
    %23 = math.tanh %22 : vector<1x128xf32>
    %cst_13 = arith.constant 1.000000e+00 : f32
    %24 = vector.broadcast %cst_13 : f32 to vector<1x128xf32>
    %25 = arith.addf %23, %24 : vector<1x128xf32>
    %cst_14 = arith.constant 5.000000e-01 : f32
    %26 = vector.broadcast %cst_14 : f32 to vector<1x128xf32>
    %27 = arith.mulf %26, %25 : vector<1x128xf32>
    %c0_15 = arith.constant 0 : index
    %c0_16 = arith.constant 0 : index
    %28 = vector.load %arg6[%c0_15, %c0_16] : memref<1x128xf32, #tpu.memory_space<vmem>>, vector<1x128xf32>
    tpu.vector_store %arg6[%c0_15, %c0_16], %27 {strides = array<i32>} : memref<1x128xf32, #tpu.memory_space<vmem>>, vector<1x128xf32>,
    return
  }
  func.func @transform_0(%arg0: i32) -> (i32, i32) {
    %c0_i32 = arith.constant 0 : i32
    %c0_i32_0 = arith.constant 0 : i32
    return %c0_i32, %arg0 : i32, i32
  }
  func.func @transform_1(%arg0: i32) -> (i32, i32) {
    %c0_i32 = arith.constant 0 : i32
    %c0_i32_0 = arith.constant 0 : i32
    %c0_i32_1 = arith.constant 0 : i32
    return %c0_i32, %c0_i32_0 : i32, i32
  }
  func.func @transform_2(%arg0: i32) -> (i32, i32) {
    %c0_i32 = arith.constant 0 : i32
    %c0_i32_0 = arith.constant 0 : i32
    %c0_i32_1 = arith.constant 0 : i32
    return %c0_i32, %c0_i32_0 : i32, i32
  }
  func.func @transform_3(%arg0: i32) -> (i32, i32) {
    %c0_i32 = arith.constant 0 : i32
    %c0_i32_0 = arith.constant 0 : i32
    %c0_i32_1 = arith.constant 0 : i32
    return %c0_i32, %c0_i32_0 : i32, i32
  }
  func.func @transform_4(%arg0: i32) -> i32 {
    %c0_i32 = arith.constant 0 : i32
    %c0_i32_0 = arith.constant 0 : i32
    return %c0_i32 : i32
  }
  func.func @transform_5(%arg0: i32) -> (i32, i32) {
    %c0_i32 = arith.constant 0 : i32
    %c0_i32_0 = arith.constant 0 : i32
    return %c0_i32, %arg0 : i32, i32
  }
}

</mosaic_0001>

<bundles_post_ra>
// kernel: tpu_custom_call.1
= control target key start
LH: loop header
LB: loop body
LE: loop exit
PB: predicated region body
PF: predicated region fallthrough
CT: control target
= control target key end

     0   :  { %s989_s0 = inlined_call_operand.vmem [shape: f32[32,256], index: 0, kind: input, shape index: {}]   ;;  %s990_s1 = inlined_call_operand.hbm [shape: f32[32,32], index: 1, kind: input, shape index: {}]   ;;  %s991_s2 = inlined_call_operand.vmem [shape: f32[32,1], index: 2, kind: input, shape index: {}]   ;;  %s992_s3 = inlined_call_operand.vmem [shape: f32[32,1], index: 3, kind: input, shape index: {}]   ;;  %s993_s4 = inlined_call_operand.<no memory space> [shape: f32[1], index: 4, kind: input, shape index: {}]   ;;  %s994_s5 = inlined_call_operand.hbm [shape: f32[1,256], index: 5, kind: output, shape index: {}]  }
   0x1   :  { %10 = sst [smem:[#allocation2]] %s993_s4 }
   0x2   :  { %11 = vsyncpa [#allocation5], 0 }
   0x3   :  { %12 = vsyncpa [#allocation6], 0 }
   0x4   :  { %14 = vsyncpa [#allocation6 + $0x1], 0  ;;  %s810_s20 = smov 0   ;;  %s812_s21 = smov 0  }
   0x5   :  { %s814_s22 = smov 0   ;;  %s816_s23 = smov 0  }
   0x6 LB: > { %s831_s4 = sadd.s32 4294967295, %s770_s23   ;;  %s561_s24 = sadd.s32 4294967294, %s770_s23   ;;  %s770_s23 = sphi %s816_s23, %s1012_s23   ;;  %s766_s22 = sphi %s814_s22, %s1011_s22   ;;  %s762_s21 = sphi %s812_s21, %s1010_s21   ;;  %s758_s20 = sphi %s810_s20, %s1009_s20  }
   0x7   : > { %s835_s25 = sadd.s32 1, %s770_s23   ;;  %s27_s26 = sadd.s32 1, %s766_s22 }
   0x8   : > { %s24_s27 = ssub.s32 %s770_s23, %s835_s25  ;;  %p34_p0 = scmp.ne.s32.totalorder %s766_s22, %s762_s21 }
   0x9   : > { %p25_p1 = scmp.eq.s32.totalorder %s24_s27, 0  ;;  %p35_p2 = scmp.eq.s32.totalorder %s770_s23, 0 }
   0xa   : > { %p148_p3 = scmp.eq.s32.totalorder %s831_s4, 1  ;;  %p153_p4 = scmp.ne.s32.totalorder %s762_s21, %s758_s20 }
   0xb   : > { %s847_s28 = scalar_select %p25_p1, %s766_s22, %s27_s26  }
   0xc   : > { %p849_p5 = por %p35_p2, %p34_p0  ;;  %p853_p6 = por %p148_p3, %p34_p0 }
   0xd   : > { %p154_p7 = scmp.eq.s32.totalorder %s561_s24, 1  ;;  %p562_p8 = scmp.ge.s32.totalorder %s770_s23, 1 }
   0xe   : > { %s998_s29 = scalar_select %p849_p5, 1, 0 }
   0xf   : > { %s999_s30 = scalar_select %p853_p6, 1, 0 }
  0x10   : > { %p161_p9 = scmp.lt.s32.totalorder %s770_s23, 3  ;;  %p859_p10 = por %p154_p7, %p153_p4 }
  0x11   : > { %p995_p11 = scmp.eq.s32.totalorder %s831_s4, 0  ;;  %s772_s8 = smov [#allocation4]  }
  0x12   : > { %s1000_s6 = scalar_select %p859_p10, 1, 0 }
  0x13   : > { %p864_p12 = pnand %p562_p8, %p161_p9  ;;  %s173_s9 = sshll.u32 %s772_s8, 4  ;;  %s174_s9 = int_to_ptr.vmem [resolvable:$true] %s173_s9 }
  0x14   : > { %s676_s13 = scalar_lea.hbm %s990_s1, 512 }
  0x15   : > { %s1001_s7 = scalar_select %p864_p12, 1, 0 }
  0x16   : > { %p617_p13 = pneg %p864_p12  ;;  %p677_p1 = scmp.ne.s32.totalorder %s990_s1, %s676_s13 }
  0x17   : > { %p683_p7 = scmp.lt.u32.totalorder %s676_s13, %s990_s1 }
  0x18   : > { %p872_p0 = pnand %p995_p11, %p617_p13 }
  0x1a   : > { %p678_p2 = pneg %p872_p0 }
  0x1c   : > { %p679_p3 = pnand %p678_p2, %p677_p1 }
  0x1e   : > { %p680_p4 = pneg %p679_p3 }
  0x20   : > { %p685_p8 = pnand %p683_p7, %p680_p4 }
  0x22   : > { %688 = shalt.err (!%p685_p8)
}
  0x23   : > { %s689_s18 = scalar_lea.vmem %s174_s9, 512  ;;  %p697_p10 = scmp.lt.s32.totalorder %s174_s9, %s174_s9 }
  0x24   : > { %p690_p9 = scmp.ne.s32.totalorder %s174_s9, %s689_s18  ;;  %p698_p6 = scmp.lt.s32.totalorder %s689_s18, %s689_s18 }
  0x26   : > { %p692_p13 = pnand %p690_p9, %p678_p2  ;;  %p699_p12 = por %p698_p6, %p697_p10 }
  0x28   : > { %p693_p11 = pneg %p692_p13 }
  0x2a   : > { %p700_p5 = pnand %p699_p12, %p693_p11 }
  0x2c   : > { %703 = shalt.err (!%p700_p5)
}
  0x2d   : > { %s773_s19 = smov 128   ;;  %s774_s24 = smov 8  }
  0x2e   : > { %620 = dma.hbm_to_vmem [thread:$0]  (!%p872_p0), %s990_s1, 512, %s174_s9, [#allocation5], %s773_s19, %s773_s19, %s774_s24  }
  0x2f   : > { %p564_p1 = scmp.ge.s32.totalorder %s770_s23, 2 }
  0x30   : > { %p1003_p2 = scmp.ne.s32.totalorder (!%p564_p1), %s998_s29, 0 }
  0x31   : > { %192 = sbr.rel (%p564_p1) target bundleno = 63 (0x3f), region = 32 }
  0x38   : > { %195 = sbr.rel (!%p1003_p2) target bundleno = 63 (0x3f), region = 36  ;;  %s197_s8 = sand.u32 (%p1003_p2), 1, %s766_s22  }
  0x39   : > { %s566_s11 = sshll.u32 (%p1003_p2), %s770_s23, 3  ;;  %s565_s12 = sshll.u32 (%p1003_p2), %s197_s8, 5 }
  0x3a   : > { %s201_s10 = scalar_lea.vmem (%p1003_p2), %s989_s0, %s566_s11  ;;  %s199_s9 = scalar_lea.vmem (%p1003_p2), [#allocation3], %s565_s12 }
  0x3b   : > { %v235_v0 = vld [vmem:[%s201_s10] sm:$0xff] (%p1003_p2)  ;;  %v237_v1 = vld [vmem:[%s201_s10 + $0x10] sm:$0xff] (%p1003_p2) }
  0x3c   : > { %v239_v2 = vld [vmem:[%s201_s10 + $0x20] sm:$0xff] (%p1003_p2)  ;;  %236 = vst [vmem:[%s199_s9] sm:$0xff] (%p1003_p2), %v235_v0  ;;  %238 = vst [vmem:[%s199_s9 + $0x8] sm:$0xff] (%p1003_p2), %v237_v1  ;;  %v241_v3 = vld [vmem:[%s201_s10 + $0x30] sm:$0xff] (%p1003_p2) }
  0x3d   : > { %240 = vst [vmem:[%s199_s9 + $0x10] sm:$0xff] (%p1003_p2), %v239_v2  ;;  %242 = vst [vmem:[%s199_s9 + $0x18] sm:$0xff] (%p1003_p2), %v241_v3 }
  0x3f PF: > { %p1004_p5 = scmp.ne.s32.totalorder %s1001_s7, 0 }
  0x40   : > { %s905_s29 = sand.u32 (!%p1004_p5), 1, %s762_s21   ;;  %p1005_p6 = scmp.eq.s32.totalorder (!%p1004_p5), %s831_s4, 0 }
  0x41   : > { %251 = sbr.rel (%p1004_p5) target bundleno = 370 (0x172), region = 74  ;;  %s568_s15 = sshll.u32 (!%p1004_p5), %s905_s29, 5 }
  0x42   : > { %s256_s16 = scalar_lea.vmem (!%p1004_p5), [#allocation3], %s568_s15 }
  0x48   : > { %749 = dma.done.wait (%p1005_p6), [#allocation5], 512   ;;  %p1006_p10 = pmov %p1005_p6 }
  0x49   : > { %v775_v4 = vmov 0   ;;  %vm316_vm0 = vcmask 261120   ;;  %v288_v5 = vld [vmem:[%s256_s16] sm:$0xff]  ;;  %v289_v6 = vld [vmem:[%s256_s16 + $0x8] sm:$0xff]  ;;  %v290_v7 = vld [vmem:[%s256_s16 + $0x10] sm:$0xff]  ;;  %s467_s7 = sld [smem:[#allocation2]] }
  0x4a   : > { %751 = vsyncadd (%p1006_p10), [#allocation5], 4294966784  ;;  %664 = vset.pattern.permute.xlu0 %v775_v4  ;;  %665 = vset.pattern.permute.xlu1 %v775_v4  ;;  %v599_v8 = vpack.c.bf16 %v289_v6, %v288_v5  ;;  %v291_v9 = vld [vmem:[%s256_s16 + $0x18] sm:$0xff]  ;;  %v284_v10 = vld [vmem:[#allocation4] sm:$0xff]  ;;  %s574_s17 = sshll.u32 %s831_s4, 4  ;;  %s283_s18 = scalar_lea.vmem [#allocation7], %s905_s29 }
  0x4b   : > { %v286_v11 = vld [vmem:[#allocation4 + $0x10] sm:$0xff]  ;;  %v603_v12 = vpack.c.bf16 %v291_v9, %v290_v7  ;;  %593 = vmatprep.mubr.msk.f32.mxu0 %vm316_vm0, %v284_v10  ;;  %v292_v13 = vld [vmem:[%s991_s2] sm:$0xff]  ;;  %v293_v15 = vld [vmem:[%s991_s2 + $0x8] sm:$0xff]  ;;  %s488_s19 = sshll.u32 %s283_s18, 4  ;;  %s945_s27 = scalar_lea.hbm %s994_s5, %s574_s17  ;;  %s947_s19 = int_to_ptr.vmem [resolvable:$true] %s488_s19 }
  0x4c   : > { %596 = vmatprep.mubr.msk.f32.mxu1 %vm316_vm0, %v286_v11  ;;  %600 = vmatprep.subr.bf16.mxu0 %v599_v8  ;;  %v294_v14 = vld [vmem:[%s991_s2 + $0x10] sm:$0xff]  ;;  %v295_v16 = vld [vmem:[%s991_s2 + $0x18] sm:$0xff]  ;;  %v285_v17 = vld [vmem:[#allocation4 + $0x8] sm:$0xff]  ;;  %s476_s8 = scalar_lea.sflag [#allocation6], %s905_s29  ;;  %s704_s11 = scalar_lea.vmem %s947_s19, 16 }
  0x4d   : > { %607 = vmatprep.subr.bf16.mxu1 %v599_v8  ;;  %602 = vmatpush3.bf16.msra.mxu0 %v599_v8  ;;  %v287_v18 = vld [vmem:[#allocation4 + $0x18] sm:$0xff]  ;;  %v430_v19 = vld [vmem:[%s992_s3] sm:$0xff]  ;;  %v431_v20 = vld [vmem:[%s992_s3 + $0x8] sm:$0xff]  ;;  %p705_p11 = scmp.ne.s32.totalorder %s947_s19, %s704_s11  ;;  %p1007_p12 = scmp.ne.s32.totalorder %s999_s30, 0 }
  0x4e   : > { %609 = vmatpush3.bf16.msra.mxu1 %v599_v8  ;;  %604 = vmatprep.subr.bf16.mxu0 %v603_v12  ;;  %v432_v21 = vld [vmem:[%s992_s3 + $0x10] sm:$0xff]  ;;  %v433_v22 = vld [vmem:[%s992_s3 + $0x18] sm:$0xff]  ;;  %s776_s4 = smov [#allocation7]  }
  0x4f   : > { %608 = vmatprep.subr.bf16.mxu1 %v603_v12  ;;  %298 = vperm.xlu0 %664, %v292_v13   ;;  %v468_v3 = vstv %s467_s7  ;;  %p706_p0 = pnand %p705_p11, %p1007_p12  ;;  %s708_s12 = sshll.u32 %s776_s4, 4  ;;  %s709_s12 = int_to_ptr.vmem [resolvable:$false] %s708_s12 }
  0x50   : > { %308 = vperm.xlu1 %665, %v294_v14   ;;  %s710_s13 = scalar_lea.vmem %s709_s12, 32  ;;  %p711_p4 = scmp.lt.s32.totalorder %s947_s19, %s709_s12 }
  0x51   : > { %606 = vmatpush3.bf16.msra.mxu0 %v603_v12  ;;  %p707_p3 = pneg %p706_p0  ;;  %p712_p7 = scmp.lt.s32.totalorder %s710_s13, %s704_s11 }
  0x52   : > { %610 = vmatpush3.bf16.msra.mxu1 %v603_v12 }
  0x53   : > { %303 = vperm.xlu0 %664, %v293_v15   ;;  %p713_p8 = por %p712_p7, %p711_p4 }
  0x54   : > { %313 = vperm.xlu1 %665, %v295_v16   ;;  %594 = vmatmul.mubr.msk.f32.vlgmr.msra.gmra.mrb[0].mxu0 %vm316_vm0, %v285_v17 }
  0x55   : > { %597 = vmatmul.mubr.msk.f32.vlgmr.msra.gmra.mrb[0].mxu1 %vm316_vm0, %v287_v18  ;;  %p714_p9 = pnand %p713_p8, %p707_p3 }
  0x57   : > { %436 = vperm.xlu0 %664, %v430_v19  }
  0x58   : > { %441 = vperm.xlu1 %665, %v431_v20  }
  0x5b   : > { %446 = vperm.xlu0 %664, %v432_v21  }
  0x5c   : > { %451 = vperm.xlu1 %665, %v433_v22  }
  0xce   : > { %v299_v23 = vpop.permute.xlu0 %298 }
  0xcf   : > { %v309_v24 = vpop.permute.xlu1 %308 }
  0xd2   : > { %v304_v25 = vpop.permute.xlu0 %303 }
  0xd3   : > { %v314_v26 = vpop.permute.xlu1 %313 }
  0xd6   : > { %v437_v43 = vpop.permute.xlu0 %436 }
  0xd7   : > { %v442_v48 = vpop.permute.xlu1 %441 }
  0xda   : > { %v447_v55 = vpop.permute.xlu0 %446 }
  0xdb   : > { %v452_v58 = vpop.permute.xlu1 %451 }
 0x127   : > { %v595_v27 = vpop.f32.mrb[0].mxu0 }
 0x128   : > { %v598_v28 = vpop.f32.mrb[0].mxu1  ;;  %v401_v29 = vadd.f32 %v595_v27, %v304_v25  ;;  %v395_v31 = vpop.f32.mrb[1].mxu0 }
 0x129   : > { %v411_v30 = vadd.f32 %v598_v28, %v314_v26  ;;  %v405_v32 = vpop.f32.mrb[1].mxu1  ;;  %v396_v33 = vadd.f32 %v395_v31, %v299_v23 }
 0x12a   : > { %v406_v34 = vadd.f32 %v405_v32, %v309_v24  ;;  %v415_v35 = vmul.f32 0.5, %v401_v29 }
 0x12b   : > { %v417_v36 = vmul.f32 0.5, %v411_v30  ;;  %v414_v37 = vmul.f32 0.5, %v396_v33 }
 0x12c   : > { %v416_v38 = vmul.f32 0.5, %v406_v34  ;;  %666 = vtanh.f32 %v415_v35 }
 0x12d   : > { %668 = vtanh.f32 %v417_v36 }
 0x12e   : > { %670 = vtanh.f32 %v414_v37 }
 0x12f   : > { %672 = vtanh.f32 %v416_v38 }
 0x136   : > { %v667_v39 = vpop.eup %666 }
 0x137   : > { %v669_v40 = vpop.eup %668  ;;  %v423_v41 = vadd.f32 1.0, %v667_v39 }
 0x138   : > { %v671_v42 = vpop.eup %670  ;;  %v425_v46 = vadd.f32 1.0, %v669_v40 }
 0x139   : > { %v673_v44 = vpop.eup %672  ;;  %v427_v45 = vmul.f32 0.5, %v423_v41  ;;  %v422_v47 = vadd.f32 1.0, %v671_v42 }
 0x13a   : > { %v424_v49 = vadd.f32 1.0, %v673_v44  ;;  %v429_v53 = vmul.f32 0.5, %v425_v46 }
 0x13b   : > { %v455_v50 = vmul.f32 %v442_v48, %v427_v45  ;;  %v426_v51 = vmul.f32 0.5, %v422_v47 }
 0x13c   : > { %v428_v52 = vmul.f32 0.5, %v424_v49  ;;  %v457_v59 = vmul.f32 %v452_v58, %v429_v53 }
 0x13d   : > { %v454_v54 = vmul.f32 %v437_v43, %v426_v51 }
 0x13e   : > { %v456_v57 = vmul.f32 %v447_v55, %v428_v52 }
 0x13f   : > { %v458_v56 = vadd.f32 %v455_v50, %v454_v54 }
 0x141   : > { %v459_v60 = vadd.f32 %v458_v56, %v456_v57 }
 0x143   : > { %v460_v61 = vadd.f32 %v459_v60, %v457_v59 }
 0x145   : > { %v461_v62 = vrot.slane %v460_v61, 4 }
 0x147   : > { %v462_v63 = vadd.f32 %v461_v62, %v460_v61 }
 0x149   : > { %v463_v0 = vrot.slane %v462_v63, 2 }
 0x14b   : > { %v464_v1 = vadd.f32 %v463_v0, %v462_v63 }
 0x14d   : > { %v465_v2 = vrot.slane %v464_v1, 1 }
 0x14f   : > { %v466_v4 = vadd.f32 %v465_v2, %v464_v1 }
 0x151   : > { %v469_v5 = vadd.f32 %v468_v3, %v466_v4 }
 0x153   : > { %v470_v6 = vmul.f32 0.5, %v469_v5 }
 0x155   : > { %674 = vtanh.f32 %v470_v6 }
 0x15f   : > { %v675_v7 = vpop.eup %674 }
 0x160   : > { %v472_v8 = vadd.f32 1.0, %v675_v7 }
 0x162   : > { %v473_v9 = vmul.f32 0.5, %v472_v8 }
 0x164   : > { %474 = vst [vmem:[%s283_s18] sm:$0x1] %v473_v9 }
 0x165   : > { %717 = shalt.err (!%p714_p9)
}
 0x166   : > { %s718_s29 = scalar_lea.hbm %s945_s27, 16  ;;  %s722_s9 = scalar_lea.hbm %s994_s5, 32 }
 0x167   : > { %p719_p13 = scmp.ne.s32.totalorder %s945_s27, %s718_s29  ;;  %p723_p6 = scmp.lt.u32.totalorder %s945_s27, %s994_s5 }
 0x168   : > { %p724_p10 = scmp.lt.u32.totalorder %s722_s9, %s718_s29  ;;  %p726_p0 = scmp.lt.u32.totalorder %s718_s29, %s945_s27 }
 0x169   : > { %p720_p2 = pnand %p719_p13, %p1007_p12 }
 0x16a   : > { %p725_p11 = por %p724_p10, %p723_p6 }
 0x16b   : > { %p721_p5 = pneg %p720_p2 }
 0x16c   : > { %p727_p3 = por %p726_p0, %p725_p11 }
 0x16e   : > { %p728_p4 = pnand %p727_p3, %p721_p5 }
 0x170   : > { %731 = shalt.err (!%p728_p4)
}
 0x171   : > { %615 = dma.vmem_to_hbm [thread:$0]  (%p1007_p12), %s947_s19, 16, %s945_s27, %s476_s8  }
 0x172 PF: > { %s500_s7 = sand.u32 1, %s758_s20   ;;  %p1008_p7 = scmp.ne.s32.totalorder %s1000_s6, 0 }
 0x173   : > { %s501_s17 = scalar_lea.sflag [#allocation6], %s500_s7 }
 0x174   : > { %p622_p8 = pnand %p564_p1, %p1008_p7 }
 0x176   : > { %753 = dma.done.wait (!%p622_p8), %s501_s17, 16  }
 0x177   : > { %755 = vsyncadd (!%p622_p8), %s501_s17, 4294967280  ;;  %p17_p9 = scmp.ge.s32.totalorder %s835_s25, 4   ;;  %s1009_s20 = smov %s762_s21 }
 0x178   : > { %s1010_s21 = smov %s766_s22  ;;  %s1011_s22 = smov %s847_s28 }
 0x179   : > { %s1012_s23 = smov %s835_s25  ;;  %19 = sbr.rel (!%p17_p9) target bundleno = 6 (0x6), region = 123 }
 0x180   :  { %505 = vsyncpa [#allocation5], 1 }
 0x181   :  { %507 = vsyncpa [#allocation5 + $0x1], 1 }
 0x182   :  { %508 = vsyncpa [#allocation6], 1 }
 0x183   :  { %510 = vsyncpa [#allocation6 + $0x1], 1 }

</bundles_post_ra>
